<compile_context>
chip_gen: v7x
topology: tpu7x:2x2x1
jax: 0.10.0
libtpu: 0.0.40
codegen_flags: <defaults>
</compile_context>

<pallas_src>
import functools

import jax
import jax.numpy as jnp
from jax.experimental import pallas as pl
from jax.experimental.pallas import tpu as pltpu

_LANES = 128
_SUBLANE_MULT = {4: 8, 2: 16, 1: 32}   # f32 / bf16 / int8-fp8 native sublane tiles


def _cdiv(a, b):
    return -(-a // b)


def _round_up(v, m):
    return _cdiv(v, m) * m


# ---------------------------------------------------------------------------
# Kernels
# ---------------------------------------------------------------------------

def _finalize_rows(sq_sum, *, distance, valid_rows):
    """(R, 128) per-position sum of squared channel diffs -> (1, 128) row-sum
    of the loss.  Rows >= valid_rows (garbage from a partial tail block) are
    dropped with a select (NOT a multiply) so NaN/Inf garbage cannot leak."""
    root_norm = jnp.sqrt(sq_sum)
    loss = (root_norm - distance) ** 2
    if valid_rows is not None:
        row = jax.lax.broadcasted_iota(jnp.int32, loss.shape, 0)
        loss = jnp.where(row < valid_rows, loss, 0.0)
    return jnp.sum(loss, axis=0, keepdims=True)


def _smooth_loss_kernel_aligned(x_ref, y_ref, out_ref, acc_ref, *, distance,
                                num_channels, chan_block, chan_ragged,
                                tail_rows, row_ragged):
    """Aligned (H*W % 128 == 0) path.

    x_ref, y_ref: (CB, R, 128) blocks; acc_ref: (R, 128) f32 scratch;
    out_ref: (1, 128) lane-dense partial.  Grid: (B, row_blocks, chan_blocks),
    channel axis innermost ("arbitrary")."""
    c = pl.program_id(2)

    @pl.when(c == 0)
    def _init():
        acc_ref[...] = jnp.zeros_like(acc_ref)

    diff = x_ref[...].astype(jnp.float32) - y_ref[...].astype(jnp.float32)
    sq = diff * diff
    if chan_ragged:
        # Last channel block reads past C: drop garbage channels (select).
        ch = jax.lax.broadcasted_iota(jnp.int32, sq.shape, 0)
        sq = jnp.where(c * chan_block + ch < num_channels, sq, 0.0)
    acc_ref[...] += jnp.sum(sq, axis=0)          # dense VPU adds over CB slabs

    last_c = c == pl.num_programs(2) - 1
    if row_ragged:
        # Only the tail row block pays for the iota mask.
        tail = pl.program_id(1) == pl.num_programs(1) - 1

        @pl.when(jnp.logical_and(last_c, jnp.logical_not(tail)))
        def _fin_full():
            out_ref[...] = _finalize_rows(acc_ref[...], distance=distance,
                                          valid_rows=None)

        @pl.when(jnp.logical_and(last_c, tail))
        def _fin_tail():
            out_ref[...] = _finalize_rows(acc_ref[...], distance=distance,
                                          valid_rows=tail_rows)
    else:
        @pl.when(last_c)
        def _fin_all():
            out_ref[...] = _finalize_rows(acc_ref[...], distance=distance,
                                          valid_rows=None)


def _smooth_loss_kernel_ragged(x_ref, y_ref, out_ref, acc_ref, *, distance,
                               num_channels, chan_block, chan_ragged,
                               tail_lanes, lane_ragged):
    """Ragged (H*W % 128 != 0) path on the unpadded (B, C, HW) view.

    x_ref, y_ref: (CB, BLK) blocks; acc_ref: (1, BLK) f32 scratch;
    out_ref: (1, 128) partial (scalar in lane 0)."""
    c = pl.program_id(2)

    @pl.when(c == 0)
    def _init():
        acc_ref[...] = jnp.zeros_like(acc_ref)

    diff = x_ref[...].astype(jnp.float32) - y_ref[...].astype(jnp.float32)
    sq = diff * diff
    if chan_ragged:
        ch = jax.lax.broadcasted_iota(jnp.int32, sq.shape, 0)
        sq = jnp.where(c * chan_block + ch < num_channels, sq, 0.0)
    acc_ref[...] += jnp.sum(sq, axis=0, keepdims=True)   # sublane (XLU) reduce

    last_c = c == pl.num_programs(2) - 1

    def _finalize(valid_lanes):
        root_norm = jnp.sqrt(acc_ref[...])
        loss = (root_norm - distance) ** 2                # (1, BLK)
        if valid_lanes is not None:
            lane = jax.lax.broadcasted_iota(jnp.int32, loss.shape, 1)
            loss = jnp.where(lane < valid_lanes, loss, 0.0)
        partial = jnp.sum(loss)                           # scalar partial sum
        out_lane = jax.lax.broadcasted_iota(jnp.int32, (1, _LANES), 1)
        out_ref[...] = jnp.where(out_lane == 0, partial, 0.0)

    if lane_ragged:
        tail = pl.program_id(1) == pl.num_programs(1) - 1

        @pl.when(jnp.logical_and(last_c, jnp.logical_not(tail)))
        def _fin_full():
            _finalize(None)

        @pl.when(jnp.logical_and(last_c, tail))
        def _fin_tail():
            _finalize(tail_lanes)
    else:
        @pl.when(last_c)
        def _fin_all():
            _finalize(None)


# ---------------------------------------------------------------------------
# Generation-dependent tuning / block planning
# ---------------------------------------------------------------------------

def _vmem_limit_bytes():
    """Scoped-VMEM budget per TensorCore keyed off physical VMEM capacity:
    v5e/v6e (128 MiB physical) -> 64 MiB; v7x / unknown (64 MiB) -> 32 MiB."""
    phys = 64 * 2**20
    try:
        info = pltpu.get_tpu_info()
        for attr in ("vmem_capacity_bytes", "vmem_bytes", "vmem_size_bytes"):
            val = getattr(info, attr, None)
            if val:
                phys = int(val)
                break
    except Exception:
        pass
    return 64 * 2**20 if phys >= 100 * 2**20 else 32 * 2**20


def _plan_aligned(C, S, itemsize, budget, cb_cap):
    """Pick (CB, NC, R, NR): channel block / #channel blocks, rows-of-128 per
    block / #row blocks, so 2 inputs x 2 pipeline buffers + the f32
    accumulator stay within `budget` VMEM bytes."""
    sub = _SUBLANE_MULT.get(itemsize, 8)

    def per_row_bytes(cb):                      # one 128-lane row held in VMEM
        return _LANES * (4 * cb * itemsize + 4)   # 2 in x 2 buf + f32 acc

    if cb_cap >= C and budget // per_row_bytes(C) >= min(S, sub):
        CB, NC = C, 1
        rows = budget // per_row_bytes(C)
        if rows >= S:
            R, NR = S, 1
        else:
            rows = max(sub, (rows // sub) * sub)
            # Balanced row blocking: no nearly-empty tail grid step.
            R = min(rows, _round_up(_cdiv(S, _cdiv(S, rows)), sub))
            NR = _cdiv(S, R)
    else:
        # Large C (or forced): clamp R to one sublane tile, block channels.
        R = S if S <= sub else sub
        NR = _cdiv(S, R)
        cb = (budget - R * _LANES * 4) // (4 * R * _LANES * itemsize)
        cb = min(cb, cb_cap, C)
        CB = C if cb >= C else max(8, (cb // 8) * 8)
        NC = _cdiv(C, CB)
    return CB, NC, R, NR


def _plan_ragged(C, HW, itemsize, budget, cb_cap):
    """Pick (CB, NC, BLK, NB) for the unpadded (B, C, HW) view.  BLK is a
    multiple of 128 (or the full HW).  Budget accounts for the sublane padding
    of the (CB, BLK) input blocks and the (1, BLK) f32 accumulator."""
    sub = _SUBLANE_MULT.get(itemsize, 8)
    G = _cdiv(HW, _LANES)                        # 128-lane groups along HW

    def per_group_bytes(cb):
        return _LANES * (4 * _round_up(cb, sub) * itemsize + 4 * 8)

    if cb_cap >= C and budget // per_group_bytes(C) >= 1:
        CB, NC = C, 1
        groups = budget // per_group_bytes(C)
        if groups >= G:
            BLK, NB = HW, 1                      # one block covering full HW
        else:
            g = _cdiv(G, _cdiv(G, groups))       # balanced lane blocking
            BLK = g * _LANES
            NB = _cdiv(HW, BLK)
    else:
        BLK = HW if HW <= _LANES else _LANES
        NB = _cdiv(HW, BLK)
        cb = (budget - 8 * _LANES * 4) // (4 * _LANES * itemsize)
        cb = min(cb, cb_cap, C)
        CB = C if cb >= C else max(8, (cb // 8) * 8)
        NC = _cdiv(C, CB)
    return CB, NC, BLK, NB


# ---------------------------------------------------------------------------
# Wrapper
# ---------------------------------------------------------------------------

def smooth_loss(x, y, *, block_budget_bytes=None, max_block_channels=None):
    """Mean over (B, H, W) of (||x - y||_2(channels) - 0.15*C)**2 for NCHW x, y.

    block_budget_bytes / max_block_channels are test/tuning overrides; by
    default block sizes are derived from the TPU generation."""
    assert x.shape == y.shape, (x.shape, y.shape)
    if y.dtype != x.dtype:
        y = y.astype(x.dtype)
    B, C, H, W = x.shape
    HW = H * W
    N = B * HW
    distance = float(0.15 * C)
    itemsize = x.dtype.itemsize

    vmem_limit = _vmem_limit_bytes()
    budget = (vmem_limit - 4 * 2**20 if block_budget_bytes is None
              else int(block_budget_bytes))
    cb_cap = C if max_block_channels is None else max(1, int(max_block_channels))

    # TODO(synk): on v7x, verify in the profile that both TensorCores stream
    # half the grid; if not, switch the batch/row axes to pltpu.CORE_PARALLEL.
    compiler_params = pltpu.CompilerParams(
        dimension_semantics=("parallel", "parallel", "arbitrary"),
        vmem_limit_bytes=vmem_limit,
    )

    if HW % _LANES == 0:
        # ---- Aligned path: free (B, C, S, 128) view, fully dense vregs. ----
        S = HW // _LANES
        CB, NC, R, NR = _plan_aligned(C, S, itemsize, budget, cb_cap)
        kernel = functools.partial(
            _smooth_loss_kernel_aligned,
            distance=distance, num_channels=C, chan_block=CB,
            chan_ragged=(C % CB != 0),
            tail_rows=S - R * (NR - 1), row_ragged=(S % R != 0))
        x_v = x.reshape(B, C, S, _LANES)
        y_v = y.reshape(B, C, S, _LANES)
        in_spec = pl.BlockSpec((None, CB, R, _LANES),
                               lambda b, r, c: (b, c, r, 0))
        scratch = pltpu.VMEM((R, _LANES), jnp.float32)
        num_blocks = NR
    else:
        # ---- Ragged path: unpadded (B, C, HW) view, no jnp.pad HBM pass. ----
        CB, NC, BLK, NB = _plan_ragged(C, HW, itemsize, budget, cb_cap)
        kernel = functools.partial(
            _smooth_loss_kernel_ragged,
            distance=distance, num_channels=C, chan_block=CB,
            chan_ragged=(C % CB != 0),
            tail_lanes=HW - BLK * (NB - 1), lane_ragged=(HW % BLK != 0))
        x_v = x.reshape(B, C, HW)
        y_v = y.reshape(B, C, HW)
        in_spec = pl.BlockSpec((None, CB, BLK), lambda b, r, c: (b, c, r))
        scratch = pltpu.VMEM((1, BLK), jnp.float32)
        num_blocks = NB

    cost = pl.CostEstimate(
        flops=int(B * HW * (3 * C + 3)),
        transcendentals=int(B * HW),
        bytes_accessed=int(2 * B * C * HW * itemsize
                           + B * num_blocks * _LANES * 4))

    partials = pl.pallas_call(
        kernel,
        out_shape=jax.ShapeDtypeStruct((B, num_blocks, 1, _LANES), jnp.float32),
        grid_spec=pltpu.PrefetchScalarGridSpec(
            num_scalar_prefetch=0,
            grid=(B, num_blocks, NC),
            in_specs=[in_spec, in_spec],
            out_specs=pl.BlockSpec((None, None, 1, _LANES),
                                   lambda b, r, c: (b, r, 0, 0)),
            scratch_shapes=[scratch],
        ),
        compiler_params=compiler_params,
        cost_estimate=cost,
    )(x_v, y_v)

    # Tiny final reduction + mean in XLA (better numerics than a running
    # scalar and keeps every grid step independent / megacore-shardable).
    return jnp.sum(partials) / N


def smooth_loss_ref(x, y):
    diff = x.astype(jnp.float32) - y.astype(jnp.float32)
    distance = 0.15 * x.shape[1]
    root_norm = jnp.sqrt(jnp.sum(diff ** 2, axis=1))
    return jnp.mean(jnp.square(root_norm - distance))


if __name__ == "__main__":
    key = jax.random.PRNGKey(0)

    cases = [
        # Primary shape implied by the module: aligned H*W, single block.
        dict(shape=(2, 4, 16, 16)),
        # Aligned path with forced channel + row blocking: exercises the
        # "arbitrary" channel grid axis, the ragged-channel mask and the
        # ragged-row tail mask.
        dict(shape=(2, 12, 48, 48), block_budget_bytes=64 * 1024,
             max_block_channels=8),
        # Ragged H*W (18*18 = 324): unpadded view, several lane blocks with a
        # masked partial tail block -- no jnp.pad HBM pass.
        dict(shape=(2, 3, 18, 18), block_budget_bytes=32 * 1024),
        # Ragged H*W smaller than one lane group (7*7 = 49): single block.
        dict(shape=(1, 2, 7, 7)),
    ]

    for i, case in enumerate(cases):
        shape = case.pop("shape")
        kx, ky = jax.random.split(jax.random.fold_in(key, i))
        x = jax.random.normal(kx, shape, dtype=jnp.float32)
        y = jax.random.normal(ky, shape, dtype=jnp.float32)
        out = jax.block_until_ready(smooth_loss(x, y, **case))
        ref = jax.block_until_ready(smooth_loss_ref(x, y))
        assert jnp.allclose(out, ref, rtol=1e-4, atol=1e-6), (shape, out, ref)

    print("KERNEL_OK")
</pallas_src>

<mosaic_0001>
module attributes {stable_mosaic.version = 11 : i64} {
  func.func @_smooth_loss_kernel_aligned(%arg0: i32, %arg1: i32, %arg2: i32, %arg3: memref<1x4x2x128xf32, #tpu.memory_space<vmem>>, %arg4: memref<1x4x2x128xf32, #tpu.memory_space<vmem>>, %arg5: memref<1x1x1x128xf32, #tpu.memory_space<vmem>>, %arg6: memref<2x128xf32, #tpu.memory_space<vmem>>) attributes {dimension_semantics = [#tpu.dimension_semantics<parallel>, #tpu.dimension_semantics<parallel>, #tpu.dimension_semantics<arbitrary>], iteration_bounds = array<i64: 2, 1, 1>, scalar_prefetch = 0 : i64, scratch_operands = 1 : i64, tpu.core_type = #tpu.core_type<tc>, window_params = [{transform_indices = @transform_0, window_bounds = array<i64: 1, 4, 2, 128>}, {transform_indices = @transform_1, window_bounds = array<i64: 1, 4, 2, 128>}, {transform_indices = @transform_2, window_bounds = array<i64: 1, 1, 1, 128>}]} {
    %c0_i32 = arith.constant 0 : i32
    %0 = arith.cmpi eq, %arg2, %c0_i32 : i32
    %1 = arith.extui %0 : i1 to i32
    %c0_i32_0 = arith.constant 0 : i32
    %2 = arith.cmpi ne, %1, %c0_i32_0 : i32
    scf.if %2 {
      %cst_14 = arith.constant 0.000000e+00 : f32
      %16 = vector.broadcast %cst_14 : f32 to vector<2x128xf32>
      %c0_15 = arith.constant 0 : index
      %c0_16 = arith.constant 0 : index
      %17 = vector.load %arg6[%c0_15, %c0_16] : memref<2x128xf32, #tpu.memory_space<vmem>>, vector<2x128xf32>
      tpu.vector_store %arg6[%c0_15, %c0_16], %16 {strides = array<i32>} : memref<2x128xf32, #tpu.memory_space<vmem>>, vector<2x128xf32>,
    } else {
    }
    %c0 = arith.constant 0 : index
    %c0_1 = arith.constant 0 : index
    %c0_2 = arith.constant 0 : index
    %c0_3 = arith.constant 0 : index
    %3 = vector.load %arg3[%c0, %c0_1, %c0_2, %c0_3] : memref<1x4x2x128xf32, #tpu.memory_space<vmem>>, vector<1x4x2x128xf32>
    %4 = vector.shape_cast %3 : vector<1x4x2x128xf32> to vector<4x2x128xf32>
    %c0_4 = arith.constant 0 : index
    %c0_5 = arith.constant 0 : index
    %c0_6 = arith.constant 0 : index
    %c0_7 = arith.constant 0 : index
    %5 = vector.load %arg4[%c0_4, %c0_5, %c0_6, %c0_7] : memref<1x4x2x128xf32, #tpu.memory_space<vmem>>, vector<1x4x2x128xf32>
    %6 = vector.shape_cast %5 : vector<1x4x2x128xf32> to vector<4x2x128xf32>
    %7 = arith.subf %4, %6 : vector<4x2x128xf32>
    %8 = arith.mulf %7, %7 : vector<4x2x128xf32>
    %c0_8 = arith.constant 0 : index
    %c0_9 = arith.constant 0 : index
    %9 = vector.load %arg6[%c0_8, %c0_9] : memref<2x128xf32, #tpu.memory_space<vmem>>, vector<2x128xf32>
    %cst = arith.constant dense<0.000000e+00> : vector<2x128xf32>
    %10 = vector.multi_reduction <add>, %8, %cst [0] : vector<4x2x128xf32> to vector<2x128xf32>
    %11 = arith.addf %9, %10 : vector<2x128xf32>
    %c0_10 = arith.constant 0 : index
    %c0_11 = arith.constant 0 : index
    %12 = vector.load %arg6[%c0_10, %c0_11] : memref<2x128xf32, #tpu.memory_space<vmem>>, vector<2x128xf32>
    tpu.vector_store %arg6[%c0_10, %c0_11], %11 {strides = array<i32>} : memref<2x128xf32, #tpu.memory_space<vmem>>, vector<2x128xf32>,
    %c0_i32_12 = arith.constant 0 : i32
    %13 = arith.cmpi eq, %arg2, %c0_i32_12 : i32
    %14 = arith.extui %13 : i1 to i32
    %c0_i32_13 = arith.constant 0 : i32
    %15 = arith.cmpi ne, %14, %c0_i32_13 : i32
    scf.if %15 {
      %c0_14 = arith.constant 0 : index
      %c0_15 = arith.constant 0 : index
      %16 = vector.load %arg6[%c0_14, %c0_15] : memref<2x128xf32, #tpu.memory_space<vmem>>, vector<2x128xf32>
      %17 = math.sqrt %16 : vector<2x128xf32>
      %cst_16 = arith.constant 6.000000e-01 : f32
      %18 = vector.broadcast %cst_16 : f32 to vector<2x128xf32>
      %19 = arith.subf %17, %18 : vector<2x128xf32>
      %20 = arith.mulf %19, %19 : vector<2x128xf32>
      %cst_17 = arith.constant dense<0.000000e+00> : vector<128xf32>
      %21 = vector.multi_reduction <add>, %20, %cst_17 [0] : vector<2x128xf32> to vector<128xf32>
      %22 = vector.shape_cast %21 : vector<128xf32> to vector<1x128xf32>
      %c0_18 = arith.constant 0 : index
      %c0_19 = arith.constant 0 : index
      %c0_20 = arith.constant 0 : index
      %c0_21 = arith.constant 0 : index
      %23 = vector.load %arg5[%c0_18, %c0_19, %c0_20, %c0_21] : memref<1x1x1x128xf32, #tpu.memory_space<vmem>>, vector<1x1x1x128xf32>
      %24 = vector.shape_cast %23 : vector<1x1x1x128xf32> to vector<1x128xf32>
      %25 = vector.shape_cast %22 : vector<1x128xf32> to vector<1x1x1x128xf32>
      tpu.vector_store %arg5[%c0_18, %c0_19, %c0_20, %c0_21], %25 {strides = array<i32>} : memref<1x1x1x128xf32, #tpu.memory_space<vmem>>, vector<1x1x1x128xf32>,
    } else {
    }
    return
  }
  func.func @transform_0(%arg0: i32, %arg1: i32, %arg2: i32) -> (i32, i32, i32, i32) {
    %c0_i32 = arith.constant 0 : i32
    %c0_i32_0 = arith.constant 0 : i32
    return %arg0, %arg2, %arg1, %c0_i32 : i32, i32, i32, i32
  }
  func.func @transform_1(%arg0: i32, %arg1: i32, %arg2: i32) -> (i32, i32, i32, i32) {
    %c0_i32 = arith.constant 0 : i32
    %c0_i32_0 = arith.constant 0 : i32
    return %arg0, %arg2, %arg1, %c0_i32 : i32, i32, i32, i32
  }
  func.func @transform_2(%arg0: i32, %arg1: i32, %arg2: i32) -> (i32, i32, i32, i32) {
    %c0_i32 = arith.constant 0 : i32
    %c0_i32_0 = arith.constant 0 : i32
    %c0_i32_1 = arith.constant 0 : i32
    return %arg0, %arg1, %c0_i32, %c0_i32_0 : i32, i32, i32, i32
  }
}

</mosaic_0001>

<bundles_post_ra>
// kernel: tpu_custom_call.1
= control target key start
LH: loop header
LB: loop body
LE: loop exit
PB: predicated region body
PF: predicated region fallthrough
CT: control target
= control target key end

     0   :  { %7 = vsyncpa [#allocation4], 0  ;;  %s914_s0 = inlined_call_operand.hbm [shape: f32[2,4,2,128], index: 0, kind: input, shape index: {}]   ;;  %s915_s1 = inlined_call_operand.hbm [shape: f32[2,4,2,128], index: 1, kind: input, shape index: {}]   ;;  %s916_s2 = inlined_call_operand.hbm [shape: f32[2,1,1,128], index: 2, kind: output, shape index: {}]  }
   0x1   :  { %9 = vsyncpa [#allocation4 + $0x1], 0 }
   0x2   :  { %10 = vsyncpa [#allocation7], 0 }
   0x3   :  { %12 = vsyncpa [#allocation7 + $0x1], 0 }
   0x4   :  { %13 = vsyncpa [#allocation5], 0 }
   0x5   :  { %15 = vsyncpa [#allocation5 + $0x1], 0  ;;  %s674_s9 = smov 0   ;;  %s676_s10 = smov 0  }
   0x6   :  { %s678_s11 = smov 0   ;;  %s680_s12 = smov 0  }
   0x7   :  { %s682_s13 = smov 0   ;;  %s684_s14 = smov 0  }
   0x8 LB: > { %s414_s15 = sadd.s32 4294967295, %s651_s14   ;;  %s415_s16 = sadd.s32 4294967294, %s651_s14   ;;  %s651_s14 = sphi %s684_s14, %s21_s14   ;;  %s647_s13 = sphi %s682_s13, %s934_s13   ;;  %s643_s12 = sphi %s680_s12, %s933_s12   ;;  %s639_s11 = sphi %s678_s11, %s932_s11   ;;  %s635_s10 = sphi %s676_s10, %s931_s10   ;;  %s631_s9 = sphi %s674_s9, %s930_s9  }
   0x9   : > { %s40_s17 = sadd.s32 1, %s647_s13  ;;  %s51_s18 = sadd.s32 1, %s639_s11 }
   0xa   : > { %p42_p0 = scmp.ge.s32.totalorder %s40_s17, 2  ;;  %p58_p1 = scmp.ne.s32.totalorder %s639_s11, %s635_s10 }
   0xb   : > { %p59_p2 = scmp.eq.s32.totalorder %s651_s14, 0  ;;  %p64_p3 = scmp.ne.s32.totalorder %s635_s10, %s631_s9 }
   0xc   : > { %s936_s17 = smov (%p42_p0, %s40_s17), 0  ;;  %p65_p5 = scmp.eq.s32.totalorder %s414_s15, 0 }
   0xd   : > { %p715_p4 = por %p59_p2, %p58_p1  ;;  %s44_s20 = ssub.s32 %s647_s13, %s936_s17 }
   0xe   : > { %p120_p6 = scmp.eq.s32.totalorder %s414_s15, 1  ;;  %p49_p7 = scmp.eq.s32.totalorder %s44_s20, 0 }
   0xf   : > { %p721_p8 = por %p65_p5, %p64_p3  ;;  %p126_p10 = scmp.eq.s32.totalorder %s415_s16, 1 }
  0x10   : > { %p725_p9 = por %p120_p6, %p58_p1  ;;  %p450_p13 = scmp.lt.s32.totalorder %s651_s14, 2 }
  0x11   : > { %s920_s21 = scalar_select %p721_p8, 1, 0 }
  0x12   : > { %s921_s22 = scalar_select %p725_p9, 1, 0 }
  0x13   : > { %s730_s23 = scalar_select %p49_p7, %s639_s11, %s51_s18  }
  0x14   : > { %p732_p11 = por %p126_p10, %p64_p3  ;;  %s739_s25 = sand.u32 1, %s639_s11  }
  0x15   : > { %s418_s26 = sshll.u32 %s739_s25, 3  ;;  %s431_s27 = sshll.u32 %s647_s13, 7 }
  0x16   : > { %s922_s24 = scalar_select %p732_p11, 1, 0 }
  0x17   : > { %s748_s30 = scalar_lea.hbm %s914_s0, %s431_s27  ;;  %s150_s3 = scalar_lea.vmem [#allocation3], %s418_s26 }
  0x18   : > { %s160_s4 = sshll.u32 %s150_s3, 4  ;;  %p756_p0 = pnand %p450_p13, %p715_p4  ;;  %s752_s4 = int_to_ptr.vmem [resolvable:$true] %s160_s4 }
  0x19   : > { %s147_s6 = scalar_lea.sflag [#allocation4], %s739_s25  ;;  %s505_s7 = scalar_lea.hbm %s748_s30, 128 }
  0x1a   : > { %p506_p2 = scmp.ne.s32.totalorder %s748_s30, %s505_s7  ;;  %p507_p3 = pneg %p756_p0 }
  0x1b   : > { %s510_s16 = scalar_lea.hbm %s914_s0, 256  ;;  %p511_p4 = scmp.lt.u32.totalorder %s748_s30, %s914_s0 }
  0x1c   : > { %p508_p5 = pnand %p507_p3, %p506_p2  ;;  %p512_p7 = scmp.lt.u32.totalorder %s510_s16, %s505_s7 }
  0x1d   : > { %p514_p13 = scmp.lt.u32.totalorder %s505_s7, %s748_s30 }
  0x1e   : > { %p509_p6 = pneg %p508_p5  ;;  %p513_p10 = por %p512_p7, %p511_p4 }
  0x20   : > { %p515_p12 = por %p514_p13, %p513_p10 }
  0x22   : > { %p516_p1 = pnand %p515_p12, %p509_p6 }
  0x24   : > { %519 = shalt.err (!%p516_p1)
}
  0x25   : > { %s520_s20 = scalar_lea.vmem %s752_s4, 128  ;;  %s653_s28 = smov [#allocation3]  }
  0x26   : > { %p521_p2 = scmp.ne.s32.totalorder %s752_s4, %s520_s20  ;;  %s525_s29 = sshll.u32 %s653_s28, 4  ;;  %s526_s29 = int_to_ptr.vmem [resolvable:$false] %s525_s29 }
  0x27   : > { %s527_s3 = scalar_lea.vmem %s526_s29, 256  ;;  %p528_p9 = scmp.lt.s32.totalorder %s752_s4, %s526_s29 }
  0x28   : > { %p523_p5 = pnand %p521_p2, %p507_p3  ;;  %p529_p4 = scmp.lt.s32.totalorder %s527_s3, %s520_s20 }
  0x2a   : > { %p524_p11 = pneg %p523_p5  ;;  %p530_p7 = por %p529_p4, %p528_p9 }
  0x2c   : > { %p531_p10 = pnand %p530_p7, %p524_p11 }
  0x2e   : > { %534 = shalt.err (!%p531_p10)
}
  0x2f   : > { %s654_s7 = smov 32   ;;  %s655_s8 = smov 2  }
  0x30   : > { %442 = dma.hbm_to_vmem [thread:$0]  (!%p756_p0), %s748_s30, 128, %s752_s4, %s147_s6, %s654_s7, %s654_s7, %s655_s8  }
  0x31   : > { %p192_p9 = scmp.lt.s32.totalorder %s651_s14, 3  ;;  %s798_s18 = scalar_lea.hbm %s915_s1, %s431_s27 }
  0x32   : > { %p924_p11 = scmp.ge.s32.totalorder %s651_s14, 1  ;;  %s174_s20 = scalar_lea.vmem [#allocation6], %s418_s26 }
  0x33   : > { %s184_s28 = sshll.u32 %s174_s20, 4  ;;  %s171_s30 = scalar_lea.sflag [#allocation7], %s739_s25  ;;  %s808_s28 = int_to_ptr.vmem [resolvable:$true] %s184_s28 }
  0x34   : > { %p802_p12 = pnand %p924_p11, %p192_p9  ;;  %s535_s4 = scalar_lea.hbm %s798_s18, 128 }
  0x35   : > { %p536_p1 = scmp.ne.s32.totalorder %s798_s18, %s535_s4  ;;  %s540_s29 = scalar_lea.hbm %s915_s1, 256 }
  0x36   : > { %p541_p2 = scmp.lt.u32.totalorder %s798_s18, %s915_s1  ;;  %p542_p5 = scmp.lt.u32.totalorder %s540_s29, %s535_s4 }
  0x37   : > { %p538_p6 = pnand %p536_p1, %p507_p3  ;;  %p544_p7 = scmp.lt.u32.totalorder %s535_s4, %s798_s18 }
  0x38   : > { %p543_p4 = por %p542_p5, %p541_p2 }
  0x39   : > { %p539_p13 = pneg %p538_p6 }
  0x3a   : > { %p545_p10 = por %p544_p7, %p543_p4 }
  0x3c   : > { %p546_p9 = pnand %p545_p10, %p539_p13 }
  0x3e   : > { %549 = shalt.err (!%p546_p9)
}
  0x3f   : > { %s550_s26 = scalar_lea.vmem %s808_s28, 128  ;;  %s656_s16 = smov [#allocation6]  }
  0x40   : > { %p551_p11 = scmp.ne.s32.totalorder %s808_s28, %s550_s26  ;;  %s555_s20 = sshll.u32 %s656_s16, 4  ;;  %s556_s20 = int_to_ptr.vmem [resolvable:$false] %s555_s20 }
  0x41   : > { %s557_s27 = scalar_lea.vmem %s556_s20, 256  ;;  %p558_p8 = scmp.lt.s32.totalorder %s808_s28, %s556_s20 }
  0x42   : > { %p553_p1 = pnand %p551_p11, %p507_p3  ;;  %p559_p2 = scmp.lt.s32.totalorder %s557_s27, %s550_s26 }
  0x44   : > { %p554_p6 = pneg %p553_p1  ;;  %p560_p5 = por %p559_p2, %p558_p8 }
  0x46   : > { %p561_p4 = pnand %p560_p5, %p554_p6 }
  0x48   : > { %564 = shalt.err (!%p561_p4)
}
  0x49   : > { %445 = dma.hbm_to_vmem [thread:$0]  (!%p756_p0), %s798_s18, 128, %s808_s28, %s171_s30, %s654_s7, %s654_s7, %s655_s8  }
  0x4a   : > { %196 = sbr.rel (%p802_p12) target bundleno = 154 (0x9a), region = 28  ;;  %s842_s4 = sand.u32 (!%p802_p12), 1, %s635_s10  }
  0x4b   : > { %s425_s6 = sshll.u32 (!%p802_p12), %s842_s4, 3  ;;  %s199_s29 = scalar_lea.sflag (!%p802_p12), [#allocation4], %s842_s4 }
  0x4c   : > { %s202_s5 = scalar_lea.vmem (!%p802_p12), [#allocation3], %s425_s6  ;;  %p926_p8 = scmp.ne.s32.totalorder (!%p802_p12), %s920_s21, 0 }
  0x51   : > { %618 = dma.done.wait (%p926_p8), %s199_s29, 128  }
  0x52   : > { %620 = vsyncadd (%p926_p8), %s199_s29, 4294967168  ;;  %s208_s25 = scalar_lea.sflag [#allocation7], %s842_s4  ;;  %s211_s7 = scalar_lea.vmem [#allocation6], %s425_s6 }
  0x53   : > { %622 = dma.done.wait (%p926_p8), %s208_s25, 128  }
  0x54   : > { %624 = vsyncadd (%p926_p8), %s208_s25, 4294967168  ;;  %v657_v0 = vmov 0.0   ;;  %v243_v1 = vld [vmem:[%s202_s5] sm:$0x3]  ;;  %v244_v2 = vld [vmem:[%s202_s5 + $0x2] sm:$0x3] }
  0x55   : > { %242 = vst [vmem:[#allocation2] sm:$0x3] %v657_v0  ;;  %v245_v3 = vld [vmem:[%s202_s5 + $0x4] sm:$0x3]  ;;  %v246_v4 = vld [vmem:[%s202_s5 + $0x6] sm:$0x3] }
  0x56   : > { %v247_v5 = vld [vmem:[%s211_s7] sm:$0x3]  ;;  %v248_v6 = vld [vmem:[%s211_s7 + $0x2] sm:$0x3]  ;;  %v249_v7 = vld [vmem:[%s211_s7 + $0x4] sm:$0x3] }
  0x57   : > { %v250_v8 = vld [vmem:[%s211_s7 + $0x6] sm:$0x3]  ;;  %v251_v9 = vsub.f32 %v243_v1, %v247_v5  ;;  %v252_v10 = vsub.f32 %v244_v2, %v248_v6  ;;  %v253_v11 = vsub.f32 %v245_v3, %v249_v7  ;;  %vm260_vm0 = vcmask 1041408   ;;  %s235_s21 = scalar_lea.vmem [#allocation8], %s842_s4  ;;  %s428_s18 = sshll.u32 %s643_s12, 4 }
  0x58   : > { %v254_v12 = vsub.f32 %v246_v4, %v250_v8  ;;  %s305_s8 = sshll.u32 %s235_s21, 4  ;;  %s867_s30 = scalar_lea.hbm %s916_s2, %s428_s18  ;;  %s862_s8 = int_to_ptr.vmem [resolvable:$true] %s305_s8 }
  0x59   : > { %v255_v13 = vmul.f32 %v251_v9, %v251_v9  ;;  %v256_v14 = vmul.f32 %v252_v10, %v252_v10  ;;  %v257_v15 = vmul.f32 %v253_v11, %v253_v11  ;;  %s292_s3 = scalar_lea.sflag [#allocation5], %s842_s4  ;;  %s565_s15 = scalar_lea.vmem %s862_s8, 16 }
  0x5a   : > { %v258_v16 = vmul.f32 %v254_v12, %v254_v12  ;;  %p566_p0 = scmp.ne.s32.totalorder %s862_s8, %s565_s15  ;;  %p927_p3 = scmp.ne.s32.totalorder %s921_s22, 0 }
  0x5b   : > { %v261_v17 = vsel %vm260_vm0, %v255_v13, 0.0  ;;  %v262_v18 = vsel %vm260_vm0, %v256_v14, 0.0  ;;  %v264_v20 = vsel %vm260_vm0, %v257_v15, 0.0  ;;  %s658_s12 = smov [#allocation8]  }
  0x5c   : > { %v263_v19 = vadd.f32 %v262_v18, %v261_v17  ;;  %v266_v21 = vsel %vm260_vm0, %v258_v16, 0.0  ;;  %v259_v23 = vld [vmem:[#allocation2] sm:$0x3]  ;;  %p567_p12 = pnand %p566_p0, %p927_p3  ;;  %s569_s26 = sshll.u32 %s658_s12, 4  ;;  %s570_s26 = int_to_ptr.vmem [resolvable:$false] %s569_s26 }
  0x5d   : > { %s571_s16 = scalar_lea.vmem %s570_s26, 32  ;;  %p572_p7 = scmp.lt.s32.totalorder %s862_s8, %s570_s26 }
  0x5e   : > { %v265_v22 = vadd.f32 %v264_v20, %v263_v19  ;;  %p568_p13 = pneg %p567_p12  ;;  %p573_p10 = scmp.lt.s32.totalorder %s571_s16, %s565_s15 }
  0x60   : > { %v267_v24 = vadd.f32 %v266_v21, %v265_v22  ;;  %p574_p9 = por %p573_p10, %p572_p7 }
  0x62   : > { %v268_v25 = vadd.f32 %v267_v24, %v259_v23  ;;  %p575_p11 = pnand %p574_p9, %p568_p13 }
  0x64   : > { %269 = vst [vmem:[#allocation2] sm:$0x3] %v268_v25 }
  0x6b   : > { %v273_v26 = vld [vmem:[#allocation2] sm:$0x3] }
  0x6c   : > { %503 = vrsqrt.f32 %v273_v26  ;;  %vm276_vm1 = vcmp.eq.f32.partialorder %v273_v26, inf  ;;  %v279_v29 = vand.u32 2147483648, %v273_v26  ;;  %vm278_vm2 = vcmp.eq.f32.partialorder %v273_v26, 0.0 }
  0x76   : > { %v504_v27 = vpop.eup %503 }
  0x77   : > { %v275_v28 = vmul.f32 %v504_v27, %v273_v26 }
  0x79   : > { %v277_v30 = vsel %vm276_vm1, %v273_v26, %v275_v28 }
  0x7a   : > { %v280_v31 = vsel %vm278_vm2, %v279_v29, %v277_v30 }
  0x7b   : > { %v427_v32 = vadd.f32 -0.6, %v280_v31 }
  0x7d   : > { %v282_v33 = vmul.f32 %v427_v32, %v427_v32 }
  0x7f   : > { %v283_v34 = vsel %vm260_vm0, %v282_v33, 0.0 }
  0x80   : > { %v284_v35 = vrot.slane %v283_v34, 4 }
  0x82   : > { %v285_v36 = vadd.f32 %v284_v35, %v283_v34 }
  0x84   : > { %v286_v37 = vrot.slane %v285_v36, 2 }
  0x86   : > { %v287_v38 = vadd.f32 %v286_v37, %v285_v36 }
  0x88   : > { %v288_v39 = vrot.slane %v287_v38, 1 }
  0x8a   : > { %v289_v40 = vadd.f32 %v288_v39, %v287_v38 }
  0x8c   : > { %290 = vst [vmem:[%s235_s21] sm:$0x1] %v289_v40 }
  0x8d   : > { %578 = shalt.err (!%p575_p11)
}
  0x8e   : > { %s579_s20 = scalar_lea.hbm %s867_s30, 16  ;;  %s583_s6 = scalar_lea.hbm %s916_s2, 32 }
  0x8f   : > { %p580_p1 = scmp.ne.s32.totalorder %s867_s30, %s579_s20  ;;  %p584_p5 = scmp.lt.u32.totalorder %s867_s30, %s916_s2 }
  0x90   : > { %p585_p4 = scmp.lt.u32.totalorder %s583_s6, %s579_s20  ;;  %p587_p0 = scmp.lt.u32.totalorder %s579_s20, %s867_s30 }
  0x91   : > { %p581_p6 = pnand %p580_p1, %p927_p3 }
  0x92   : > { %p586_p8 = por %p585_p4, %p584_p5 }
  0x93   : > { %p582_p2 = pneg %p581_p6 }
  0x94   : > { %p588_p12 = por %p587_p0, %p586_p8 }
  0x96   : > { %p589_p13 = pnand %p588_p12, %p582_p2 }
  0x98   : > { %592 = shalt.err (!%p589_p13)
}
  0x99   : > { %437 = dma.vmem_to_hbm [thread:$0]  (%p927_p3), %s862_s8, 16, %s867_s30, %s292_s3  }
  0x9a PF: > { %s317_s25 = sand.u32 1, %s631_s9   ;;  %p928_p7 = scmp.ne.s32.totalorder %s922_s24, 0 }
  0x9b   : > { %p929_p10 = scmp.ge.s32.totalorder %s651_s14, 2  ;;  %s318_s7 = scalar_lea.sflag [#allocation5], %s317_s25 }
  0x9d   : > { %p447_p9 = pnand %p929_p10, %p928_p7 }
  0x9f   : > { %626 = dma.done.wait (!%p447_p9), %s318_s7, 16  }
  0xa0   : > { %628 = vsyncadd (!%p447_p9), %s318_s7, 4294967280  ;;  %s21_s14 = sadd.s32 1, %s651_s14   ;;  %s930_s9 = smov %s635_s10 }
  0xa1   : > { %p18_p11 = scmp.ge.s32.totalorder %s21_s14, 4   ;;  %s931_s10 = smov %s639_s11 }
  0xa2   : > { %s932_s11 = smov %s730_s23  ;;  %s933_s12 = smov %s647_s13 }
  0xa3   : > { %s934_s13 = smov %s936_s17  ;;  %20 = sbr.rel (!%p18_p11) target bundleno = 8 (0x8), region = 94 }
  0xaa   :  { %322 = vsyncpa [#allocation4], 1 }
  0xab   :  { %324 = vsyncpa [#allocation4 + $0x1], 1 }
  0xac   :  { %325 = vsyncpa [#allocation7], 1 }
  0xad   :  { %327 = vsyncpa [#allocation7 + $0x1], 1 }
  0xae   :  { %328 = vsyncpa [#allocation5], 1 }
  0xaf   :  { %330 = vsyncpa [#allocation5 + $0x1], 1 }

</bundles_post_ra>
